<compile_context>
chip_gen: v5e
topology: v5e:2x2
jax: 0.10.0
libtpu: 0.0.40
codegen_flags: <defaults>
</compile_context>

<pallas_src>
import jax
import jax.numpy as jnp
from jax.experimental import pallas as pl
from jax.experimental.pallas import tpu as pltpu


# --------------------------------------------------------------------------
# Kernel
# --------------------------------------------------------------------------
def residual_ff_kernel(x_ref, w1_ref, b1_ref, w2_ref, b2_ref, o_ref, acc_ref):
    """One (row-tile, H-tile) step of o = relu(x @ W1 + b1) @ W2 + b2 + x.

    x_ref : (Tm, Dp) f32      w1_ref: (Dp, Th) bf16   b1_ref: (1, Th) f32
    w2_ref: (Th, Dp) bf16     b2_ref: (1, Dp) f32     o_ref : (Tm, Dp)
    acc_ref: (Tm, Dp) f32 scratch, resident across the H (reduction) axis.
    """
    ht = pl.program_id(1)

    @pl.when(ht == 0)
    def _():
        acc_ref[...] = jnp.zeros_like(acc_ref)

    x = x_ref[...]                                      # f32 (exact residual)

    # MXU matmul 1: bf16 operands, f32 accumulation.
    h = jnp.dot(x.astype(jnp.bfloat16), w1_ref[...],
                preferred_element_type=jnp.float32)
    h = jnp.maximum(h + b1_ref[...], 0.0)               # f32 bias + ReLU (VPU)

    # MXU matmul 2: partial contribution of this H tile, accumulated in f32.
    # (ReLU output is downcast to bf16 for the MXU — documented precision
    # trade-off, reflected in the test tolerance.)
    acc_ref[...] += jnp.dot(h.astype(jnp.bfloat16), w2_ref[...],
                            preferred_element_type=jnp.float32)

    @pl.when(ht == pl.num_programs(1) - 1)
    def _():
        # Final bias + residual connection (the Residual module's semantics),
        # exact in f32 against the original x.
        o_ref[...] = (acc_ref[...] + b2_ref[...] + x).astype(o_ref.dtype)


# --------------------------------------------------------------------------
# Sizing helpers
# --------------------------------------------------------------------------
def _round_up(n, m):
    return (n + m - 1) // m * m


def _physical_vmem_bytes():
    # Hardware-capability probe only (NOT an error-masking retry around the
    # kernel build).  Falls back to the smallest per-TC VMEM across
    # v5e/v6e/v7x (v7x: 64 MiB) if the query is unavailable.
    try:
        return int(pltpu.get_tpu_info().vmem_capacity_bytes)
    except Exception:
        return 64 << 20


def _choose_tile_rows(rows):
    """Pick the M tile: divide rows exactly, keep M >= 256 when possible,
    prefer an even row-grid (v7x has 2 TensorCores on the parallel axis)."""
    # Even grid, but never at the cost of dropping M below 256.
    for t in (512, 256):
        if rows % t == 0 and (rows // t) % 2 == 0:
            return t, rows
    # Otherwise the largest exact divisor (no row padding -> no extra traffic).
    for t in (512, 256, 128, 64, 32, 16, 8):
        if rows % t == 0:
            return t, rows
    # Ragged row count: pad up to a multiple of 256 (padded rows are garbage
    # after relu(b1)@W2 + b2 and are sliced off in the wrapper).
    return 256, _round_up(rows, 256)


def _choose_tile_h(Dp, Hp, vmem_cap):
    """Keep weights resident (single H tile) when they comfortably fit in
    ~1/3 of usable VMEM; otherwise stream H tiles (shrink K/N, never M)."""
    budget = max((vmem_cap - (12 << 20)) // 3, 8 << 20)
    per_h_col_bytes = 2 * 2 * 2 * Dp          # W1+W2 slabs, bf16, double-buffered
    if per_h_col_bytes * Hp <= budget:
        return Hp
    tile_h = max((budget // per_h_col_bytes) // 128 * 128, 128)
    while Hp % tile_h != 0:                   # keep an exact H grid
        tile_h -= 128
    return max(tile_h, 128)


def _vmem_limit_bytes(tile_rows, Dp, tile_h, vmem_cap):
    f32, bf16 = 4, 2
    need = 0
    need += 2 * tile_rows * Dp * f32          # x tile   (double-buffered)
    need += 2 * tile_rows * Dp * f32          # out tile (double-buffered)
    need += 2 * Dp * tile_h * bf16            # W1 tile  (double-buffered)
    need += 2 * tile_h * Dp * bf16            # W2 tile  (double-buffered)
    need += 2 * 8 * (tile_h + Dp) * f32       # b1 / b2 blocks (sublane-padded)
    need += tile_rows * Dp * f32              # acc scratch
    need += tile_rows * tile_h * f32          # h intermediate
    need = int(need * 1.5) + (4 << 20)        # compiler scratch / temporaries
    headroom = 12 << 20                       # leave internal scratch room
    return int(min(max(need, 32 << 20), vmem_cap - headroom))


# --------------------------------------------------------------------------
# Wrapper
# --------------------------------------------------------------------------
def prepare_ffn_params(w1, b1, w2, b2):
    """Pad weights to lane-dense multiples of 128 and cast to bf16 ONCE at
    init (not per forward call).  Zero-padded H columns are exact:
    relu(0 + 0) = 0 contributes nothing to the second matmul."""
    D, H = w1.shape
    Dp, Hp = _round_up(D, 128), _round_up(H, 128)
    return dict(
        w1=jnp.pad(w1, ((0, Dp - D), (0, Hp - H))).astype(jnp.bfloat16),
        b1=jnp.pad(b1.reshape(1, H), ((0, 0), (0, Hp - H))).astype(jnp.float32),
        w2=jnp.pad(w2, ((0, Hp - H), (0, Dp - D))).astype(jnp.bfloat16),
        b2=jnp.pad(b2.reshape(1, D), ((0, 0), (0, Dp - D))).astype(jnp.float32),
        D=D, H=H, Dp=Dp, Hp=Hp,
    )


def _build_call(rows_p, Dp, Hp, tile_rows, tile_h, out_dtype, vmem_limit):
    return pl.pallas_call(
        residual_ff_kernel,
        out_shape=jax.ShapeDtypeStruct((rows_p, Dp), out_dtype),
        grid_spec=pltpu.PrefetchScalarGridSpec(
            num_scalar_prefetch=0,
            grid=(rows_p // tile_rows, Hp // tile_h),   # reduction (H) last
            in_specs=[
                pl.BlockSpec((tile_rows, Dp), lambda i, ht: (i, 0)),   # x
                pl.BlockSpec((Dp, tile_h), lambda i, ht: (0, ht)),     # W1
                pl.BlockSpec((1, tile_h), lambda i, ht: (0, ht)),      # b1
                pl.BlockSpec((tile_h, Dp), lambda i, ht: (ht, 0)),     # W2
                pl.BlockSpec((1, Dp), lambda i, ht: (0, 0)),           # b2
            ],
            out_specs=pl.BlockSpec((tile_rows, Dp), lambda i, ht: (i, 0)),
            scratch_shapes=[pltpu.VMEM((tile_rows, Dp), jnp.float32)],
        ),
        compiler_params=pltpu.CompilerParams(
            dimension_semantics=("parallel", "arbitrary"),
            vmem_limit_bytes=vmem_limit,
        ),
    )


def residual_feedforward(x, params):
    """y = fn(x) + x with fn = Linear -> ReLU -> Linear, fused in one kernel.

    x: (B, S, D) float32; params: output of prepare_ffn_params.
    """
    B, S, D = x.shape
    assert D == params["D"], "x feature dim does not match the FFN weights"
    Dp, Hp = params["Dp"], params["Hp"]
    rows = B * S

    tile_rows, rows_p = _choose_tile_rows(rows)
    vmem_cap = _physical_vmem_bytes()
    tile_h = _choose_tile_h(Dp, Hp, vmem_cap)
    vmem_limit = _vmem_limit_bytes(tile_rows, Dp, tile_h, vmem_cap)

    x2d = x.reshape(rows, D)
    padded = (rows_p != rows) or (Dp != D)
    if padded:
        # NOTE: zero-padded ROWS are not exact (relu(0 + b1) != 0); they carry
        # garbage and are harmless only because they are sliced off below.
        x2d = jnp.pad(x2d, ((0, rows_p - rows), (0, Dp - D)))

    out2d = _build_call(rows_p, Dp, Hp, tile_rows, tile_h, x.dtype, vmem_limit)(
        x2d, params["w1"], params["b1"], params["w2"], params["b2"])

    if padded:
        out2d = out2d[:rows, :D]
    return out2d.reshape(B, S, D)


# --------------------------------------------------------------------------
# Reference + demo
# --------------------------------------------------------------------------
def reference(x, w1, b1, w2, b2):
    h = jnp.maximum(jnp.einsum("bsd,dh->bsh", x, w1) + b1[0], 0.0)
    y = jnp.einsum("bsh,hd->bsd", h, w2) + b2[0]
    return y + x


if __name__ == "__main__":
    # Small but lane-dense demo shapes (D, H multiples of 128; rows = 512 and
    # tile_rows = 256 give a 2-step parallel row grid -> both v7x TCs busy).
    B, S, D, H = 2, 256, 128, 256

    key = jax.random.PRNGKey(0)
    kx, kw1, kb1, kw2, kb2 = jax.random.split(key, 5)

    x = jax.random.normal(kx, (B, S, D), dtype=jnp.float32)
    w1 = jax.random.normal(kw1, (D, H), dtype=jnp.float32) * 0.1
    b1 = jax.random.normal(kb1, (1, H), dtype=jnp.float32) * 0.1
    w2 = jax.random.normal(kw2, (H, D), dtype=jnp.float32) * 0.1
    b2 = jax.random.normal(kb2, (1, D), dtype=jnp.float32) * 0.1

    # Pad/cast weights once at init (hoisted out of the forward path).
    params = prepare_ffn_params(w1, b1, w2, b2)

    out = residual_feedforward(x, params)
    out = jax.block_until_ready(out)

    ref = reference(x, w1, b1, w2, b2)
    assert out.shape == x.shape
    # bf16 MXU operands with f32 accumulation: tolerance is looser than a
    # pure-f32 reference (intentional, see kernel comment).
    err = jnp.max(jnp.abs(out - ref))
    assert jnp.allclose(out, ref, atol=1e-1, rtol=5e-2), (
        f"mismatch vs reference: max abs err {err:.4e}")

    print("KERNEL_OK")
</pallas_src>

<mosaic_0001>
module attributes {stable_mosaic.version = 11 : i64} {
  func.func @residual_ff_kernel(%arg0: i32, %arg1: i32, %arg2: memref<256x128xf32, #tpu.memory_space<vmem>>, %arg3: memref<128x256xbf16, #tpu.memory_space<vmem>>, %arg4: memref<1x256xf32, #tpu.memory_space<vmem>>, %arg5: memref<256x128xbf16, #tpu.memory_space<vmem>>, %arg6: memref<1x128xf32, #tpu.memory_space<vmem>>, %arg7: memref<256x128xf32, #tpu.memory_space<vmem>>, %arg8: memref<256x128xf32, #tpu.memory_space<vmem>>) attributes {dimension_semantics = [#tpu.dimension_semantics<parallel>, #tpu.dimension_semantics<arbitrary>], iteration_bounds = array<i64: 2, 1>, scalar_prefetch = 0 : i64, scratch_operands = 1 : i64, tpu.core_type = #tpu.core_type<tc>, window_params = [{transform_indices = @transform_0, window_bounds = array<i64: 256, 128>}, {transform_indices = @transform_1, window_bounds = array<i64: 128, 256>}, {transform_indices = @transform_2, window_bounds = array<i64: 1, 256>}, {transform_indices = @transform_3, window_bounds = array<i64: 256, 128>}, {pipeline_mode = #tpu.pipeline_mode<synchronous>, transform_indices = @transform_4, window_bounds = array<i64: 1, 128>}, {transform_indices = @transform_5, window_bounds = array<i64: 256, 128>}]} {
    %c0_i32 = arith.constant 0 : i32
    %0 = arith.cmpi eq, %arg1, %c0_i32 : i32
    %1 = arith.extui %0 : i1 to i32
    %c0_i32_0 = arith.constant 0 : i32
    %2 = arith.cmpi ne, %1, %c0_i32_0 : i32
    scf.if %2 {
      %cst_16 = arith.constant 0.000000e+00 : f32
      %21 = vector.broadcast %cst_16 : f32 to vector<256x128xf32>
      %c0_17 = arith.constant 0 : index
      %c0_18 = arith.constant 0 : index
      %22 = vector.load %arg8[%c0_17, %c0_18] : memref<256x128xf32, #tpu.memory_space<vmem>>, vector<256x128xf32>
      tpu.vector_store %arg8[%c0_17, %c0_18], %21 {strides = array<i32>} : memref<256x128xf32, #tpu.memory_space<vmem>>, vector<256x128xf32>,
    } else {
    }
    %c0 = arith.constant 0 : index
    %c0_1 = arith.constant 0 : index
    %3 = vector.load %arg2[%c0, %c0_1] : memref<256x128xf32, #tpu.memory_space<vmem>>, vector<256x128xf32>
    %4 = arith.truncf %3 : vector<256x128xf32> to vector<256x128xbf16>
    %c0_2 = arith.constant 0 : index
    %c0_3 = arith.constant 0 : index
    %5 = vector.load %arg3[%c0_2, %c0_3] : memref<128x256xbf16, #tpu.memory_space<vmem>>, vector<128x256xbf16>
    %cst = arith.constant dense<0.000000e+00> : vector<256x256xf32>
    %6 = tpu.matmul %4, %5, %cst {dimension_numbers = #tpu.dot_dimension_numbers<[1], [0], [0], [1], [0, 0, 1, 1], [], []>} : vector<256x128xbf16>, vector<128x256xbf16>, vector<256x256xf32> -> vector<256x256xf32>
    %c0_4 = arith.constant 0 : index
    %c0_5 = arith.constant 0 : index
    %7 = vector.load %arg4[%c0_4, %c0_5] : memref<1x256xf32, #tpu.memory_space<vmem>>, vector<1x256xf32>
    %8 = vector.broadcast %7 : vector<1x256xf32> to vector<256x256xf32>
    %9 = arith.addf %6, %8 : vector<256x256xf32>
    %cst_6 = arith.constant 0.000000e+00 : f32
    %10 = vector.broadcast %cst_6 : f32 to vector<256x256xf32>
    %11 = arith.maximumf %9, %10 : vector<256x256xf32>
    %c0_7 = arith.constant 0 : index
    %c0_8 = arith.constant 0 : index
    %12 = vector.load %arg8[%c0_7, %c0_8] : memref<256x128xf32, #tpu.memory_space<vmem>>, vector<256x128xf32>
    %13 = arith.truncf %11 : vector<256x256xf32> to vector<256x256xbf16>
    %c0_9 = arith.constant 0 : index
    %c0_10 = arith.constant 0 : index
    %14 = vector.load %arg5[%c0_9, %c0_10] : memref<256x128xbf16, #tpu.memory_space<vmem>>, vector<256x128xbf16>
    %cst_11 = arith.constant dense<0.000000e+00> : vector<256x128xf32>
    %15 = tpu.matmul %13, %14, %cst_11 {dimension_numbers = #tpu.dot_dimension_numbers<[1], [0], [0], [1], [0, 0, 1, 1], [], []>} : vector<256x256xbf16>, vector<256x128xbf16>, vector<256x128xf32> -> vector<256x128xf32>
    %16 = arith.addf %12, %15 : vector<256x128xf32>
    %c0_12 = arith.constant 0 : index
    %c0_13 = arith.constant 0 : index
    %17 = vector.load %arg8[%c0_12, %c0_13] : memref<256x128xf32, #tpu.memory_space<vmem>>, vector<256x128xf32>
    tpu.vector_store %arg8[%c0_12, %c0_13], %16 {strides = array<i32>} : memref<256x128xf32, #tpu.memory_space<vmem>>, vector<256x128xf32>,
    %c0_i32_14 = arith.constant 0 : i32
    %18 = arith.cmpi eq, %arg1, %c0_i32_14 : i32
    %19 = arith.extui %18 : i1 to i32
    %c0_i32_15 = arith.constant 0 : i32
    %20 = arith.cmpi ne, %19, %c0_i32_15 : i32
    scf.if %20 {
      %c0_16 = arith.constant 0 : index
      %c0_17 = arith.constant 0 : index
      %21 = vector.load %arg8[%c0_16, %c0_17] : memref<256x128xf32, #tpu.memory_space<vmem>>, vector<256x128xf32>
      %c0_18 = arith.constant 0 : index
      %c0_19 = arith.constant 0 : index
      %22 = vector.load %arg6[%c0_18, %c0_19] : memref<1x128xf32, #tpu.memory_space<vmem>>, vector<1x128xf32>
      %23 = vector.broadcast %22 : vector<1x128xf32> to vector<256x128xf32>
      %24 = arith.addf %21, %23 : vector<256x128xf32>
      %25 = arith.addf %24, %3 : vector<256x128xf32>
      %c0_20 = arith.constant 0 : index
      %c0_21 = arith.constant 0 : index
      %26 = vector.load %arg7[%c0_20, %c0_21] : memref<256x128xf32, #tpu.memory_space<vmem>>, vector<256x128xf32>
      tpu.vector_store %arg7[%c0_20, %c0_21], %25 {strides = array<i32>} : memref<256x128xf32, #tpu.memory_space<vmem>>, vector<256x128xf32>,
    } else {
    }
    return
  }
  func.func @transform_0(%arg0: i32, %arg1: i32) -> (i32, i32) {
    %c0_i32 = arith.constant 0 : i32
    %c0_i32_0 = arith.constant 0 : i32
    return %arg0, %c0_i32 : i32, i32
  }
  func.func @transform_1(%arg0: i32, %arg1: i32) -> (i32, i32) {
    %c0_i32 = arith.constant 0 : i32
    %c0_i32_0 = arith.constant 0 : i32
    return %c0_i32, %arg1 : i32, i32
  }
  func.func @transform_2(%arg0: i32, %arg1: i32) -> (i32, i32) {
    %c0_i32 = arith.constant 0 : i32
    %c0_i32_0 = arith.constant 0 : i32
    return %c0_i32, %arg1 : i32, i32
  }
  func.func @transform_3(%arg0: i32, %arg1: i32) -> (i32, i32) {
    %c0_i32 = arith.constant 0 : i32
    %c0_i32_0 = arith.constant 0 : i32
    return %arg1, %c0_i32 : i32, i32
  }
  func.func @transform_4(%arg0: i32, %arg1: i32) -> (i32, i32) {
    %c0_i32 = arith.constant 0 : i32
    %c0_i32_0 = arith.constant 0 : i32
    %c0_i32_1 = arith.constant 0 : i32
    return %c0_i32, %c0_i32_0 : i32, i32
  }
  func.func @transform_5(%arg0: i32, %arg1: i32) -> (i32, i32) {
    %c0_i32 = arith.constant 0 : i32
    %c0_i32_0 = arith.constant 0 : i32
    return %arg0, %c0_i32 : i32, i32
  }
}

</mosaic_0001>

<bundles_post_ra>
// kernel: tpu_custom_call.1
= control target key start
LH: loop header
LB: loop body
LE: loop exit
PB: predicated region body
PF: predicated region fallthrough
CT: control target
= control target key end

     0   :  { %s2479_s0 = inlined_call_operand.hbm [shape: f32[512,128], index: 0, kind: input, shape index: {}]   ;;  %s2480_s1 = inlined_call_operand.hbm [shape: bf16[128,256], index: 1, kind: input, shape index: {}]   ;;  %s2481_s2 = inlined_call_operand.hbm [shape: f32[1,256], index: 2, kind: input, shape index: {}]   ;;  %s2482_s3 = inlined_call_operand.hbm [shape: bf16[256,128], index: 3, kind: input, shape index: {}]   ;;  %s2483_s4 = inlined_call_operand.vmem [shape: f32[1,128], index: 4, kind: input, shape index: {}]   ;;  %s2484_s5 = inlined_call_operand.hbm [shape: f32[512,128], index: 5, kind: output, shape index: {}]  }
   0x1   :  { %2487 = sst [smem:[#allocation16_spill]] %s2480_s1 }
   0x2   :  { %2488 = sst [smem:[#allocation17_spill]] %s2481_s2 }
   0x3   :  { %2489 = sst [smem:[#allocation18_spill]] %s2482_s3 }
   0x4   :  { %10 = vsyncpa [#allocation4], 0 }
   0x5   :  { %12 = vsyncpa [#allocation4 + $0x1], 0 }
   0x6   :  { %13 = vsyncpa [#allocation7], 0 }
   0x7   :  { %14 = vsyncpa [#allocation10], 0 }
   0x8   :  { %15 = vsyncpa [#allocation5], 0 }
   0x9   :  { %17 = vsyncpa [#allocation5 + $0x1], 0  ;;  %s1996_s18 = smov 0   ;;  %s1998_s19 = smov 0  }
   0xa   :  { %s2000_s20 = smov 0   ;;  %s2002_s21 = smov 0  }
   0xb   :  { %s2004_s22 = smov 0   ;;  %s2006_s23 = smov 0  }
   0xc LB: > { %s1462_s24 = sadd.s32 4294967295, %s1955_s23   ;;  %s1463_s25 = sadd.s32 4294967294, %s1955_s23   ;;  %s1955_s23 = sphi %s2006_s23, %s23_s23   ;;  %s1951_s22 = sphi %s2004_s22, %s2507_s22   ;;  %s1947_s21 = sphi %s2002_s21, %s2506_s21   ;;  %s1943_s20 = sphi %s2000_s20, %s2505_s20   ;;  %s1939_s19 = sphi %s1998_s19, %s2504_s19   ;;  %s1935_s18 = sphi %s1996_s18, %s2503_s18  }
   0xd   : > { %p55_p0 = scmp.ne.s32.totalorder %s1939_s19, %s1935_s18  ;;  %p2030_p1 = scmp.eq.s32.totalorder %s1462_s24, 0 }
   0xe   : > { %p2034_p2 = scmp.eq.s32.totalorder %s1462_s24, 1  ;;  %p184_p3 = scmp.eq.s32.totalorder %s1463_s25, 1 }
   0xf   : > { %p2040_p4 = por %p2030_p1, %p55_p0  ;;  %p1464_p5 = scmp.ge.s32.totalorder %s1955_s23, 1 }
  0x10   : > { %p2045_p6 = por %p184_p3, %p55_p0  ;;  %p191_p7 = scmp.lt.s32.totalorder %s1955_s23, 3 }
  0x11   : > { %s2494_s1 = sld [smem:[#allocation16_spill]]  ;;  %s1957_s9 = smov [#allocation6]  }
  0x12   : > { %p2053_p8 = pnand %p1464_p5, %p191_p7  ;;  %s207_s10 = sshll.u32 %s1957_s9, 4  ;;  %s208_s10 = int_to_ptr.vmem [resolvable:$true] %s207_s10 }
  0x13   : > { %p1468_p11 = scmp.ge.s32.totalorder %s1955_s23, 2  ;;  %s2497_s2 = sld [smem:[#allocation17_spill]] }
  0x14   : > { %p1661_p9 = pneg %p2053_p8  ;;  %s2485_s15 = smov 128  }
  0x15   : > { %s2486_s16 = smov 8   ;;  %s1960_s17 = smov [#allocation8]  }
  0x16   : > { %p2061_p10 = pnand %p1661_p9, %p2030_p1  ;;  %s224_s24 = sshll.u32 %s1960_s17, 4  ;;  %s225_s24 = int_to_ptr.vmem [resolvable:$true] %s224_s24 }
  0x17   : > { %s205_s7 = sshll.u32 %s2494_s1, 4  ;;  %s2498_s3 = sld [smem:[#allocation18_spill]]  ;;  %s206_s7 = int_to_ptr.hbm [resolvable:$true] %s205_s7 }
  0x18   : > { %1664 = dma.hbm_to_vmem [thread:$0]  (!%p2061_p10), %s206_s7, 2048, %s208_s10, [#allocation7], %s2485_s15, %s2485_s15, %s2486_s16  }
  0x19   : > { %s222_s14 = sshll.u32 %s2497_s2, 4  ;;  %s1961_s9 = smov [#allocation9]   ;;  %s223_s14 = int_to_ptr.hbm [resolvable:$true] %s222_s14 }
  0x1a   : > { %1667 = dma.hbm_to_vmem [thread:$0]  (!%p2061_p10), %s223_s14, 32, %s225_s24, [#allocation7]  }
  0x1b   : > { %s238_s12 = sshll.u32 %s1961_s9, 4  ;;  %s1962_s13 = smov 64   ;;  %s239_s12 = int_to_ptr.vmem [resolvable:$true] %s238_s12 }
  0x1c   : > { %s1963_s7 = smov 4   ;;  %s42_s10 = sadd.s32 1, %s1943_s20 }
  0x1d   : > { %s236_s6 = sshll.u32 %s2498_s3, 4  ;;  %s35_s17 = sadd.s32 1, %s1951_s22  ;;  %s237_s6 = int_to_ptr.hbm [resolvable:$true] %s236_s6 }
  0x1e   : > { %1670 = dma.hbm_to_vmem [thread:$0]  (!%p2061_p10), %s237_s6, 2048, %s239_s12, [#allocation10], %s1962_s13, %s1962_s13, %s1963_s7  }
  0x1f   : > { %p49_p12 = scmp.ne.s32.totalorder %s1943_s20, %s1939_s19  ;;  %p37_p13 = scmp.ge.s32.totalorder %s35_s17, 2 }
  0x20   : > { %p50_p0 = scmp.eq.s32.totalorder %s1955_s23, 0  ;;  %p1682_p5 = scmp.lt.s32.totalorder %s1955_s23, 2 }
  0x21   : > { %p2088_p3 = por %p2034_p2, %p49_p12  ;;  %s2509_s17 = smov (%p37_p13, %s35_s17), 0 }
  0x22   : > { %p2095_p7 = por %p50_p0, %p49_p12  ;;  %s255_s11 = sand.u32 1, %s1943_s20  }
  0x23   : > { %s39_s24 = ssub.s32 %s1951_s22, %s2509_s17  ;;  %s1469_s30 = sshll.u32 %s255_s11, 8 }
  0x24   : > { %p40_p9 = scmp.eq.s32.totalorder %s39_s24, 0  ;;  %s1611_s6 = sshll.u32 %s1951_s22, 8 }
  0x25   : > { %s264_s13 = scalar_lea.hbm %s2479_s0, %s1611_s6  ;;  %s259_s7 = scalar_lea.vmem [#allocation3], %s1469_s30 }
  0x26   : > { %s2104_s27 = scalar_select %p40_p9, %s1943_s20, %s42_s10  }
  0x27   : > { %s267_s15 = sshll.u32 %s259_s7, 4  ;;  %s265_s16 = sshll.u32 %s264_s13, 4  ;;  %s268_s15 = int_to_ptr.vmem [resolvable:$true] %s267_s15  ;;  %s266_s16 = int_to_ptr.hbm [resolvable:$true] %s265_s16 }
  0x28   : > { %p1672_p2 = pnand %p1682_p5, %p2095_p7  ;;  %s256_s1 = scalar_lea.sflag [#allocation4], %s255_s11 }
  0x29   : > { %s2501_s2 = smov 8   ;;  %s2502_s3 = smov 128  }
  0x2a   : > { %1674 = dma.hbm_to_vmem [thread:$0]  (!%p1672_p2), %s266_s16, 4096, %s268_s15, %s256_s1, %s2502_s3, %s2502_s3, %s2501_s2  }
  0x2b   : > { %279 = sbr.rel (%p2053_p8) target bundleno = 618 (0x26a), region = 40  ;;  %s2119_s10 = sand.u32 (!%p2053_p8), 1, %s1939_s19  }
  0x2c   : > { %s1473_s24 = sshll.u32 (!%p2053_p8), %s2119_s10, 8  ;;  %s282_s30 = scalar_lea.sflag (!%p2053_p8), [#allocation4], %s2119_s10 }
  0x2d   : > { %s2125_s14 = scalar_lea.vmem (!%p2053_p8), [#allocation3], %s1473_s24 }
  0x30   : > { %1918 = dma.done.wait (%p2040_p4), %s282_s30, 4096  }
  0x31   : > { %1920 = vsyncadd (%p2040_p4), %s282_s30, 4294963200 }
  0x32   : > { %1922 = dma.done.wait (%p2030_p1), [#allocation7], 2080  }
  0x33   : > { %1924 = vsyncadd (%p2030_p1), [#allocation7], 4294965216 }
  0x34   : > { %1926 = dma.done.wait (%p2030_p1), [#allocation10], 2048  }
  0x35   : > { %1928 = vsyncadd (%p2030_p1), [#allocation10], 4294965248  ;;  %v1536_v0 = vld [vmem:[#allocation6 + $0x70] sm:$0xf]  ;;  %v1627_v1 = vld [vmem:[#allocation6 + $0x74] sm:$0xf0] }
  0x36   : > { %v1626_v2 = vld [vmem:[#allocation6 + $0x74] sm:$0xf]  ;;  %v1537_v3 = vor.u32 %v1627_v1, %v1536_v0  ;;  %v1538_v4 = vld [vmem:[#allocation6 + $0x78] sm:$0xf0]  ;;  %v1528_v5 = vld [vmem:[#allocation6 + $0x60] sm:$0xf] }
  0x37   : > { %v1625_v6 = vld [vmem:[#allocation6 + $0x64] sm:$0xf0]  ;;  %v1541_v7 = vor.u32 %v1626_v2, %v1538_v4  ;;  %v1624_v8 = vld [vmem:[#allocation6 + $0x64] sm:$0xf]  ;;  %v1530_v9 = vld [vmem:[#allocation6 + $0x68] sm:$0xf0] }
  0x38   : > { %519 = vmatpush.bf16.msra.mxu0 %v1537_v3  ;;  %v1529_v10 = vor.u32 %v1625_v6, %v1528_v5  ;;  %v1533_v11 = vor.u32 %v1624_v8, %v1530_v9  ;;  %v1520_v12 = vld [vmem:[#allocation6 + $0x50] sm:$0xf]  ;;  %v1623_v13 = vld [vmem:[#allocation6 + $0x54] sm:$0xf0]  ;;  %v1622_v14 = vld [vmem:[#allocation6 + $0x54] sm:$0xf] }
  0x39   : > { %608 = vmatpush.bf16.msra.mxu1 %v1541_v7  ;;  %v1522_v15 = vld [vmem:[#allocation6 + $0x58] sm:$0xf0]  ;;  %v1521_v16 = vor.u32 %v1623_v13, %v1520_v12  ;;  %v1512_v18 = vld [vmem:[#allocation6 + $0x40] sm:$0xf]  ;;  %v1621_v19 = vld [vmem:[#allocation6 + $0x44] sm:$0xf0] }
  0x3a   : > { %v1525_v17 = vor.u32 %v1622_v14, %v1522_v15  ;;  %v1620_v20 = vld [vmem:[#allocation6 + $0x44] sm:$0xf]  ;;  %v1514_v21 = vld [vmem:[#allocation6 + $0x48] sm:$0xf0]  ;;  %v1513_v22 = vor.u32 %v1621_v19, %v1512_v18  ;;  %v1504_v24 = vld [vmem:[#allocation6 + $0x30] sm:$0xf] }
  0x3b   : > { %v1517_v23 = vor.u32 %v1620_v20, %v1514_v21  ;;  %v1619_v25 = vld [vmem:[#allocation6 + $0x34] sm:$0xf0]  ;;  %v1618_v26 = vld [vmem:[#allocation6 + $0x34] sm:$0xf]  ;;  %v1506_v27 = vld [vmem:[#allocation6 + $0x38] sm:$0xf0] }
  0x3c   : > { %520 = vmatpush.bf16.msra.mxu0 %v1529_v10  ;;  %v1505_v28 = vor.u32 %v1619_v25, %v1504_v24  ;;  %v1509_v29 = vor.u32 %v1618_v26, %v1506_v27  ;;  %v1496_v30 = vld [vmem:[#allocation6 + $0x20] sm:$0xf]  ;;  %v1617_v31 = vld [vmem:[#allocation6 + $0x24] sm:$0xf0]  ;;  %v1616_v32 = vld [vmem:[#allocation6 + $0x24] sm:$0xf] }
  0x3d   : > { %609 = vmatpush.bf16.msra.mxu1 %v1533_v11  ;;  %v1498_v33 = vld [vmem:[#allocation6 + $0x28] sm:$0xf0]  ;;  %v1497_v34 = vor.u32 %v1617_v31, %v1496_v30  ;;  %v1488_v36 = vld [vmem:[#allocation6 + $0x10] sm:$0xf]  ;;  %v1615_v37 = vld [vmem:[#allocation6 + $0x14] sm:$0xf0] }
  0x3e   : > { %v1501_v35 = vor.u32 %v1616_v32, %v1498_v33  ;;  %v1614_v38 = vld [vmem:[#allocation6 + $0x14] sm:$0xf]  ;;  %v1490_v39 = vld [vmem:[#allocation6 + $0x18] sm:$0xf0]  ;;  %v1489_v40 = vor.u32 %v1615_v37, %v1488_v36  ;;  %v1480_v42 = vld [vmem:[#allocation6] sm:$0xf] }
  0x3f   : > { %v1493_v41 = vor.u32 %v1614_v38, %v1490_v39  ;;  %v1613_v43 = vld [vmem:[#allocation6 + $0x4] sm:$0xf0]  ;;  %v1612_v44 = vld [vmem:[#allocation6 + $0x4] sm:$0xf]  ;;  %v1482_v45 = vld [vmem:[#allocation6 + $0x8] sm:$0xf0] }
  0x40   : > { %521 = vmatpush.bf16.msra.mxu0 %v1521_v16  ;;  %v1481_v46 = vor.u32 %v1613_v43, %v1480_v42  ;;  %v2140_v47 = vld [vmem:[%s2125_s14] sm:$0xff]  ;;  %v2143_v48 = vld [vmem:[%s2125_s14 + $0x8] sm:$0xff]  ;;  %v1485_v49 = vor.u32 %v1612_v44, %v1482_v45  ;;  %v2148_v51 = vld [vmem:[%s2125_s14 + $0x10] sm:$0xff]  ;;  %s2319_s3 = scalar_lea.vmem [#allocation11], %s1473_s24  ;;  %s1644_s26 = sshll.u32 %s1947_s21, 8 }
  0x41   : > { %610 = vmatpush.bf16.msra.mxu1 %v1525_v17  ;;  %v401_v50 = vpack.c.bf16 %v2143_v48, %v2140_v47  ;;  %v2151_v52 = vld [vmem:[%s2125_s14 + $0x18] sm:$0xff]  ;;  %v2156_v54 = vld [vmem:[%s2125_s14 + $0x20] sm:$0xff]  ;;  %v2159_v55 = vld [vmem:[%s2125_s14 + $0x28] sm:$0xff]  ;;  %s1342_s15 = scalar_lea.hbm %s2484_s5, %s1644_s26  ;;  %s1343_s16 = sshll.u32 %s2319_s3, 4  ;;  %s1344_s16 = int_to_ptr.vmem [resolvable:$true] %s1343_s16 }
  0x42   : > { %v402_v53 = vpack.c.bf16 %v2151_v52, %v2148_v51  ;;  %v403_v56 = vpack.c.bf16 %v2159_v55, %v2156_v54  ;;  %v2164_v57 = vld [vmem:[%s2125_s14 + $0x30] sm:$0xff]  ;;  %v2167_v58 = vld [vmem:[%s2125_s14 + $0x38] sm:$0xff]  ;;  %v2172_v60 = vld [vmem:[%s2125_s14 + $0x40] sm:$0xff]  ;;  %s1345_s11 = sshll.u32 %s1342_s15, 4  ;;  %s1331_s21 = scalar_lea.sflag [#allocation5], %s2119_s10  ;;  %s1346_s11 = int_to_ptr.hbm [resolvable:$true] %s1345_s11 }
  0x43   : > { %v404_v59 = vpack.c.bf16 %v2167_v58, %v2164_v57  ;;  %v2175_v61 = vld [vmem:[%s2125_s14 + $0x48] sm:$0xff]  ;;  %v1635_v63 = vld [vmem:[#allocation9 + $0x38] sm:$0xff]  ;;  %v2180_v1 = vld [vmem:[%s2125_s14 + $0x50] sm:$0xff]  ;;  %s1879_s6 = sshra.s32 %s1346_s11, 4  ;;  %s1885_s7 = scalar_lea.hbm %s2484_s5, 512  ;;  %s1880_s6 = int_to_ptr.hbm [resolvable:$true] %s1879_s6 }
  0x44   : > { %522 = vmatpush.bf16.msra.mxu0 %v1513_v22  ;;  %v405_v62 = vpack.c.bf16 %v2175_v61, %v2172_v60  ;;  %v1643_v0 = vld [vmem:[#allocation9 + $0x78] sm:$0xff]  ;;  %953 = vmatpush.bf16.msra.mxu2 %v1635_v63  ;;  %v1634_v4 = vld [vmem:[#allocation9 + $0x30] sm:$0xff]  ;;  %v1633_v6 = vld [vmem:[#allocation9 + $0x28] sm:$0xff]  ;;  %s1881_s9 = scalar_lea.hbm %s1880_s6, 256  ;;  %p1886_p10 = scmp.lt.s32.totalorder %s1880_s6, %s2484_s5 }
  0x45   : > { %611 = vmatpush.bf16.msra.mxu1 %v1517_v23  ;;  %1042 = vmatpush.bf16.msra.mxu3 %v1643_v0  ;;  %v2183_v2 = vld [vmem:[%s2125_s14 + $0x58] sm:$0xff]  ;;  %v1641_v7 = vld [vmem:[#allocation9 + $0x68] sm:$0xff]  ;;  %v1632_v8 = vld [vmem:[#allocation9 + $0x20] sm:$0xff]  ;;  %p1882_p1 = scmp.ne.s32.totalorder %s1880_s6, %s1881_s9  ;;  %p1887_p12 = scmp.lt.s32.totalorder %s1885_s7, %s1881_s9 }
  0x46   : > { %v406_v3 = vpack.c.bf16 %v2183_v2, %v2180_v1  ;;  %v1642_v5 = vld [vmem:[#allocation9 + $0x70] sm:$0xff]  ;;  %v1640_v9 = vld [vmem:[#allocation9 + $0x60] sm:$0xff]  ;;  %v1631_v13 = vld [vmem:[#allocation9 + $0x18] sm:$0xff] }
  0x47   : > { %v2188_v10 = vld [vmem:[%s2125_s14 + $0x60] sm:$0xff]  ;;  %v2191_v11 = vld [vmem:[%s2125_s14 + $0x68] sm:$0xff]  ;;  %v1630_v15 = vld [vmem:[#allocation9 + $0x10] sm:$0xff]  ;;  %p1883_p4 = pnand %p1882_p1, %p2088_p3  ;;  %p1888_p13 = por %p1887_p12, %p1886_p10 }
  0x48   : > { %523 = vmatpush.bf16.msra.mxu0 %v1505_v28  ;;  %954 = vmatpush.bf16.msra.mxu2 %v1634_v4  ;;  %v407_v12 = vpack.c.bf16 %v2191_v11, %v2188_v10  ;;  %v1639_v14 = vld [vmem:[#allocation9 + $0x58] sm:$0xff]  ;;  %v1638_v16 = vld [vmem:[#allocation9 + $0x50] sm:$0xff]  ;;  %v1629_v17 = vld [vmem:[#allocation9 + $0x8] sm:$0xff] }
  0x49   : > { %612 = vmatpush.bf16.msra.mxu1 %v1509_v29  ;;  %1043 = vmatpush.bf16.msra.mxu3 %v1642_v5  ;;  %v1637_v18 = vld [vmem:[#allocation9 + $0x48] sm:$0xff]  ;;  %v1628_v19 = vld [vmem:[#allocation9] sm:$0xff]  ;;  %v2199_v22 = vld [vmem:[%s2125_s14 + $0x78] sm:$0xff]  ;;  %p1884_p8 = pneg %p1883_p4 }
  0x4a   : > { %v1636_v20 = vld [vmem:[#allocation9 + $0x40] sm:$0xff]  ;;  %v2196_v21 = vld [vmem:[%s2125_s14 + $0x70] sm:$0xff]  ;;  %v433_v27 = vld [vmem:[#allocation8] sm:$0x3] }
  0x4b   : > { %v408_v23 = vpack.c.bf16 %v2199_v22, %v2196_v21  ;;  %v2204_v24 = vld [vmem:[%s2125_s14 + $0x80] sm:$0xff]  ;;  %v2207_v25 = vld [vmem:[%s2125_s14 + $0x88] sm:$0xff]  ;;  %v2211_v30 = vperm.slane %v433_v27, 0  ;;  %v2213_v31 = vperm.slane %v433_v27, 1  ;;  %v2220_v42 = vld [vmem:[%s2125_s14 + $0x90] sm:$0xff]  ;;  %p1889_p0 = pnand %p1888_p13, %p1884_p8 }
  0x4c   : > { %524 = vmatpush.bf16.msra.mxu0 %v1497_v34  ;;  %955 = vmatpush.bf16.msra.mxu2 %v1633_v6  ;;  %v409_v26 = vpack.c.bf16 %v2207_v25, %v2204_v24  ;;  %v2223_v43 = vld [vmem:[%s2125_s14 + $0x98] sm:$0xff] }
  0x4d   : > { %613 = vmatpush.bf16.msra.mxu1 %v1501_v35  ;;  %1044 = vmatpush.bf16.msra.mxu3 %v1641_v7  ;;  %v2232_v7 = vld [vmem:[%s2125_s14 + $0xa0] sm:$0xff] }
  0x50   : > { %525 = vmatpush.bf16.msra.mxu0 %v1489_v40  ;;  %956 = vmatpush.bf16.msra.mxu2 %v1632_v8  ;;  %v2235_v8 = vld [vmem:[%s2125_s14 + $0xa8] sm:$0xff] }
  0x51   : > { %614 = vmatpush.bf16.msra.mxu1 %v1493_v41  ;;  %1045 = vmatpush.bf16.msra.mxu3 %v1640_v9 }
  0x54   : > { %526 = vmatpush.bf16.msra.mxu0 %v1481_v46  ;;  %957 = vmatpush.bf16.msra.mxu2 %v1631_v13  ;;  %v410_v46 = vpack.c.bf16 %v2223_v43, %v2220_v42  ;;  %v411_v13 = vpack.c.bf16 %v2235_v8, %v2232_v7 }
  0x55   : > { %615 = vmatpush.bf16.msra.mxu1 %v1485_v49  ;;  %1046 = vmatpush.bf16.msra.mxu3 %v1639_v14 }
  0x57   : > { %527 = vmatmul.bf16.vlgmr.msra.gmra.mxu0 %v401_v50 }
  0x58   : > { %616 = vmatmul.bf16.vlgmr.msra.gmra.mxu1 %v401_v50  ;;  %958 = vmatpush.bf16.msra.mxu2 %v1630_v15 }
  0x59   : > { %1047 = vmatpush.bf16.msra.mxu3 %v1638_v16 }
  0x5c   : > { %959 = vmatpush.bf16.msra.mxu2 %v1629_v17 }
  0x5d   : > { %1048 = vmatpush.bf16.msra.mxu3 %v1637_v18 }
  0x60   : > { %960 = vmatpush.bf16.msra.mxu2 %v1628_v19 }
  0x61   : > { %1049 = vmatpush.bf16.msra.mxu3 %v1636_v20 }
  0x67   : > { %532 = vmatmul.bf16.gmra.mxu0 %v402_v53 }
  0x68   : > { %621 = vmatmul.bf16.gmra.mxu1 %v402_v53 }
  0x77   : > { %537 = vmatmul.bf16.gmra.mxu0 %v403_v56 }
  0x78   : > { %626 = vmatmul.bf16.gmra.mxu1 %v403_v56 }
  0x87   : > { %542 = vmatmul.bf16.gmra.mxu0 %v404_v59 }
  0x88   : > { %631 = vmatmul.bf16.gmra.mxu1 %v404_v59 }
  0x97   : > { %547 = vmatmul.bf16.gmra.mxu0 %v405_v62 }
  0x98   : > { %636 = vmatmul.bf16.gmra.mxu1 %v405_v62 }
  0xa7   : > { %552 = vmatmul.bf16.gmra.mxu0 %v406_v3 }
  0xa8   : > { %641 = vmatmul.bf16.gmra.mxu1 %v406_v3 }
  0xb7   : > { %557 = vmatmul.bf16.gmra.mxu0 %v407_v12 }
  0xb8   : > { %646 = vmatmul.bf16.gmra.mxu1 %v407_v12 }
  0xc7   : > { %562 = vmatmul.bf16.gmra.mxu0 %v408_v23 }
  0xc8   : > { %651 = vmatmul.bf16.gmra.mxu1 %v408_v23 }
  0xd4   : > { %v528_v28 = vpop.f32.mrf.mxu0 }
  0xd5   : > { %v617_v29 = vpop.f32.mrf.mxu1  ;;  %v529_v32 = vadd.f32 %v528_v28, %v2211_v30 }
  0xd6   : > { %v618_v33 = vadd.f32 %v617_v29, %v2213_v31 }
  0xd7   : > { %567 = vmatmul.bf16.gmra.mxu0 %v409_v26  ;;  %v697_v38 = vmax.f32 %v529_v32, 0.0  ;;  %v2244_v32 = vld [vmem:[%s2125_s14 + $0xb0] sm:$0xff] }
  0xd8   : > { %656 = vmatmul.bf16.gmra.mxu1 %v409_v26  ;;  %v698_v40 = vmax.f32 %v618_v33, 0.0  ;;  %v2247_v33 = vld [vmem:[%s2125_s14 + $0xb8] sm:$0xff] }
  0xdc   : > { %v530_v34 = vpop.f32.mrf.mxu0 }
  0xdd   : > { %v531_v35 = vadd.f32 %v530_v34, %v2211_v30  ;;  %v619_v36 = vpop.f32.mrf.mxu1 }
  0xde   : > { %v620_v37 = vadd.f32 %v619_v36, %v2213_v31  ;;  %v412_v36 = vpack.c.bf16 %v2247_v33, %v2244_v32 }
  0xdf   : > { %v699_v39 = vmax.f32 %v531_v35, 0.0 }
  0xe0   : > { %v700_v41 = vmax.f32 %v620_v37, 0.0 }
  0xe1   : > { %v793_v44 = vpack.c.bf16 %v699_v39, %v697_v38 }
  0xe2   : > { %v794_v45 = vpack.c.bf16 %v700_v41, %v698_v40 }
  0xe3   : > { %961 = vmatmul.bf16.vlgmr.msra.gmra.mxu2 %v793_v44 }
  0xe4   : > { %1050 = vmatmul.bf16.vlgmr.msra.gmra.mxu3 %v794_v45  ;;  %v533_v49 = vpop.f32.mrf.mxu0 }
  0xe5   : > { %v622_v50 = vpop.f32.mrf.mxu1  ;;  %v534_v53 = vadd.f32 %v533_v49, %v2211_v30 }
  0xe6   : > { %v623_v56 = vadd.f32 %v622_v50, %v2213_v31 }
  0xe7   : > { %572 = vmatmul.bf16.gmra.mxu0 %v410_v46  ;;  %v701_v3 = vmax.f32 %v534_v53, 0.0 }
  0xe8   : > { %661 = vmatmul.bf16.gmra.mxu1 %v410_v46  ;;  %v702_v5 = vmax.f32 %v623_v56, 0.0 }
  0xec   : > { %v535_v59 = vpop.f32.mrf.mxu0 }
  0xed   : > { %v536_v62 = vadd.f32 %v535_v59, %v2211_v30  ;;  %v624_v63 = vpop.f32.mrf.mxu1  ;;  %v2256_v59 = vld [vmem:[%s2125_s14 + $0xc0] sm:$0xff] }
  0xee   : > { %v625_v0 = vadd.f32 %v624_v63, %v2213_v31 }
  0xef   : > { %v703_v4 = vmax.f32 %v536_v62, 0.0  ;;  %v2259_v62 = vld [vmem:[%s2125_s14 + $0xc8] sm:$0xff] }
  0xf0   : > { %v704_v6 = vmax.f32 %v625_v0, 0.0 }
  0xf1   : > { %v795_v9 = vpack.c.bf16 %v703_v4, %v701_v3  ;;  %v413_v3 = vpack.c.bf16 %v2259_v62, %v2256_v59 }
  0xf2   : > { %v796_v12 = vpack.c.bf16 %v704_v6, %v702_v5 }
  0xf3   : > { %966 = vmatmul.bf16.gmra.mxu2 %v795_v9 }
  0xf4   : > { %1055 = vmatmul.bf16.gmra.mxu3 %v796_v12  ;;  %v538_v14 = vpop.f32.mrf.mxu0 }
  0xf5   : > { %v627_v15 = vpop.f32.mrf.mxu1  ;;  %v539_v16 = vadd.f32 %v538_v14, %v2211_v30 }
  0xf6   : > { %v628_v17 = vadd.f32 %v627_v15, %v2213_v31 }
  0xf7   : > { %577 = vmatmul.bf16.gmra.mxu0 %v411_v13  ;;  %v705_v26 = vmax.f32 %v539_v16, 0.0 }
  0xf8   : > { %666 = vmatmul.bf16.gmra.mxu1 %v411_v13  ;;  %v706_v28 = vmax.f32 %v628_v17, 0.0 }
  0xfc   : > { %v540_v18 = vpop.f32.mrf.mxu0 }
  0xfd   : > { %v541_v19 = vadd.f32 %v540_v18, %v2211_v30  ;;  %v629_v20 = vpop.f32.mrf.mxu1 }
  0xfe   : > { %v630_v23 = vadd.f32 %v629_v20, %v2213_v31  ;;  %v2268_v20 = vld [vmem:[%s2125_s14 + $0xd0] sm:$0xff] }
  0xff   : > { %v707_v27 = vmax.f32 %v541_v19, 0.0 }
 0x100   : > { %v708_v29 = vmax.f32 %v630_v23, 0.0  ;;  %v2271_v23 = vld [vmem:[%s2125_s14 + $0xd8] sm:$0xff] }
 0x101   : > { %v797_v34 = vpack.c.bf16 %v707_v27, %v705_v26 }
 0x102   : > { %v798_v35 = vpack.c.bf16 %v708_v29, %v706_v28  ;;  %v414_v28 = vpack.c.bf16 %v2271_v23, %v2268_v20 }
 0x103   : > { %971 = vmatmul.bf16.gmra.mxu2 %v797_v34 }
 0x104   : > { %1060 = vmatmul.bf16.gmra.mxu3 %v798_v35  ;;  %v543_v37 = vpop.f32.mrf.mxu0 }
 0x105   : > { %v632_v38 = vpop.f32.mrf.mxu1  ;;  %v544_v39 = vadd.f32 %v543_v37, %v2211_v30 }
 0x106   : > { %v633_v40 = vadd.f32 %v632_v38, %v2213_v31 }
 0x107   : > { %582 = vmatmul.bf16.gmra.mxu0 %v412_v36  ;;  %v709_v49 = vmax.f32 %v544_v39, 0.0 }
 0x108   : > { %671 = vmatmul.bf16.gmra.mxu1 %v412_v36  ;;  %v710_v53 = vmax.f32 %v633_v40, 0.0 }
 0x10c   : > { %v545_v41 = vpop.f32.mrf.mxu0 }
 0x10d   : > { %v546_v44 = vadd.f32 %v545_v41, %v2211_v30  ;;  %v634_v45 = vpop.f32.mrf.mxu1 }
 0x10e   : > { %v635_v46 = vadd.f32 %v634_v45, %v2213_v31 }
 0x10f   : > { %v711_v50 = vmax.f32 %v546_v44, 0.0 }
 0x110   : > { %v712_v56 = vmax.f32 %v635_v46, 0.0 }
 0x111   : > { %v799_v63 = vpack.c.bf16 %v711_v50, %v709_v49  ;;  %v2280_v49 = vld [vmem:[%s2125_s14 + $0xe0] sm:$0xff]  ;;  %v2283_v50 = vld [vmem:[%s2125_s14 + $0xe8] sm:$0xff] }
 0x112   : > { %v800_v0 = vpack.c.bf16 %v712_v56, %v710_v53 }
 0x113   : > { %976 = vmatmul.bf16.gmra.mxu2 %v799_v63  ;;  %v415_v63 = vpack.c.bf16 %v2283_v50, %v2280_v49 }
 0x114   : > { %1065 = vmatmul.bf16.gmra.mxu3 %v800_v0  ;;  %v548_v4 = vpop.f32.mrf.mxu0 }
 0x115   : > { %v637_v5 = vpop.f32.mrf.mxu1  ;;  %v549_v6 = vadd.f32 %v548_v4, %v2211_v30 }
 0x116   : > { %v638_v9 = vadd.f32 %v637_v5, %v2213_v31 }
 0x117   : > { %587 = vmatmul.bf16.gmra.mxu0 %v413_v3  ;;  %v713_v16 = vmax.f32 %v549_v6, 0.0 }
 0x118   : > { %676 = vmatmul.bf16.gmra.mxu1 %v413_v3  ;;  %v714_v18 = vmax.f32 %v638_v9, 0.0 }
 0x11c   : > { %v550_v12 = vpop.f32.mrf.mxu0 }
 0x11d   : > { %v551_v13 = vadd.f32 %v550_v12, %v2211_v30  ;;  %v639_v14 = vpop.f32.mrf.mxu1 }
 0x11e   : > { %v640_v15 = vadd.f32 %v639_v14, %v2213_v31 }
 0x11f   : > { %v715_v17 = vmax.f32 %v551_v13, 0.0 }
 0x120   : > { %v716_v19 = vmax.f32 %v640_v15, 0.0 }
 0x121   : > { %v801_v26 = vpack.c.bf16 %v715_v17, %v713_v16 }
 0x122   : > { %v802_v27 = vpack.c.bf16 %v716_v19, %v714_v18  ;;  %v2292_v18 = vld [vmem:[%s2125_s14 + $0xf0] sm:$0xff]  ;;  %v2295_v19 = vld [vmem:[%s2125_s14 + $0xf8] sm:$0xff] }
 0x123   : > { %981 = vmatmul.bf16.gmra.mxu2 %v801_v26 }
 0x124   : > { %1070 = vmatmul.bf16.gmra.mxu3 %v802_v27  ;;  %v553_v29 = vpop.f32.mrf.mxu0 }
 0x125   : > { %v642_v34 = vpop.f32.mrf.mxu1  ;;  %v554_v35 = vadd.f32 %v553_v29, %v2211_v30 }
 0x126   : > { %v643_v36 = vadd.f32 %v642_v34, %v2213_v31 }
 0x127   : > { %592 = vmatmul.bf16.gmra.mxu0 %v414_v28  ;;  %v717_v41 = vmax.f32 %v554_v35, 0.0 }
 0x128   : > { %681 = vmatmul.bf16.gmra.mxu1 %v414_v28  ;;  %v718_v45 = vmax.f32 %v643_v36, 0.0  ;;  %v416_v28 = vpack.c.bf16 %v2295_v19, %v2292_v18 }
 0x12c   : > { %v555_v37 = vpop.f32.mrf.mxu0 }
 0x12d   : > { %v556_v38 = vadd.f32 %v555_v37, %v2211_v30  ;;  %v644_v39 = vpop.f32.mrf.mxu1 }
 0x12e   : > { %v645_v40 = vadd.f32 %v644_v39, %v2213_v31 }
 0x12f   : > { %v719_v44 = vmax.f32 %v556_v38, 0.0 }
 0x130   : > { %v720_v46 = vmax.f32 %v645_v40, 0.0 }
 0x131   : > { %v803_v53 = vpack.c.bf16 %v719_v44, %v717_v41 }
 0x132   : > { %v804_v56 = vpack.c.bf16 %v720_v46, %v718_v45 }
 0x133   : > { %986 = vmatmul.bf16.gmra.mxu2 %v803_v53 }
 0x134   : > { %1075 = vmatmul.bf16.gmra.mxu3 %v804_v56  ;;  %v558_v0 = vpop.f32.mrf.mxu0 }
 0x135   : > { %v647_v3 = vpop.f32.mrf.mxu1  ;;  %v559_v4 = vadd.f32 %v558_v0, %v2211_v30 }
 0x136   : > { %v648_v5 = vadd.f32 %v647_v3, %v2213_v31 }
 0x137   : > { %597 = vmatmul.bf16.gmra.mxu0 %v415_v63  ;;  %v721_v14 = vmax.f32 %v559_v4, 0.0 }
 0x138   : > { %686 = vmatmul.bf16.gmra.mxu1 %v415_v63  ;;  %v722_v16 = vmax.f32 %v648_v5, 0.0 }
 0x13c   : > { %v560_v6 = vpop.f32.mrf.mxu0 }
 0x13d   : > { %v561_v9 = vadd.f32 %v560_v6, %v2211_v30  ;;  %v649_v12 = vpop.f32.mrf.mxu1 }
 0x13e   : > { %v650_v13 = vadd.f32 %v649_v12, %v2213_v31 }
 0x13f   : > { %v723_v15 = vmax.f32 %v561_v9, 0.0 }
 0x140   : > { %v724_v17 = vmax.f32 %v650_v13, 0.0 }
 0x141   : > { %v805_v26 = vpack.c.bf16 %v723_v15, %v721_v14 }
 0x142   : > { %v806_v27 = vpack.c.bf16 %v724_v17, %v722_v16 }
 0x143   : > { %991 = vmatmul.bf16.gmra.mxu2 %v805_v26 }
 0x144   : > { %1080 = vmatmul.bf16.gmra.mxu3 %v806_v27  ;;  %v563_v29 = vpop.f32.mrf.mxu0 }
 0x145   : > { %v652_v34 = vpop.f32.mrf.mxu1  ;;  %v564_v35 = vadd.f32 %v563_v29, %v2211_v30 }
 0x146   : > { %v653_v36 = vadd.f32 %v652_v34, %v2213_v31  ;;  %v2310_v34 = vld [vmem:[%s2483_s4] ss:$0 sm:$0xff] }
 0x147   : > { %602 = vmatmul.bf16.gmra.mxu0 %v416_v28  ;;  %v725_v41 = vmax.f32 %v564_v35, 0.0 }
 0x148   : > { %691 = vmatmul.bf16.gmra.mxu1 %v416_v28  ;;  %v726_v45 = vmax.f32 %v653_v36, 0.0 }
 0x14c   : > { %v565_v37 = vpop.f32.mrf.mxu0 }
 0x14d   : > { %v566_v38 = vadd.f32 %v565_v37, %v2211_v30  ;;  %v654_v39 = vpop.f32.mrf.mxu1 }
 0x14e   : > { %v655_v40 = vadd.f32 %v654_v39, %v2213_v31 }
 0x14f   : > { %v727_v44 = vmax.f32 %v566_v38, 0.0 }
 0x150   : > { %v728_v46 = vmax.f32 %v655_v40, 0.0 }
 0x151   : > { %v807_v53 = vpack.c.bf16 %v727_v44, %v725_v41 }
 0x152   : > { %v808_v56 = vpack.c.bf16 %v728_v46, %v726_v45 }
 0x153   : > { %996 = vmatmul.bf16.gmra.mxu2 %v807_v53 }
 0x154   : > { %1085 = vmatmul.bf16.gmra.mxu3 %v808_v56  ;;  %v568_v63 = vpop.f32.mrf.mxu0 }
 0x155   : > { %v657_v0 = vpop.f32.mrf.mxu1  ;;  %v569_v3 = vadd.f32 %v568_v63, %v2211_v30 }
 0x156   : > { %v658_v4 = vadd.f32 %v657_v0, %v2213_v31 }
 0x157   : > { %v729_v13 = vmax.f32 %v569_v3, 0.0 }
 0x158   : > { %v730_v15 = vmax.f32 %v658_v4, 0.0 }
 0x15c   : > { %v570_v5 = vpop.f32.mrf.mxu0 }
 0x15d   : > { %v571_v6 = vadd.f32 %v570_v5, %v2211_v30  ;;  %v659_v9 = vpop.f32.mrf.mxu1 }
 0x15e   : > { %v660_v12 = vadd.f32 %v659_v9, %v2213_v31 }
 0x15f   : > { %v731_v14 = vmax.f32 %v571_v6, 0.0 }
 0x160   : > { %v732_v16 = vmax.f32 %v660_v12, 0.0 }
 0x161   : > { %v809_v17 = vpack.c.bf16 %v731_v14, %v729_v13 }
 0x162   : > { %v810_v26 = vpack.c.bf16 %v732_v16, %v730_v15 }
 0x163   : > { %1001 = vmatmul.bf16.gmra.mxu2 %v809_v17 }
 0x164   : > { %1090 = vmatmul.bf16.gmra.mxu3 %v810_v26  ;;  %v573_v27 = vpop.f32.mrf.mxu0 }
 0x165   : > { %v662_v28 = vpop.f32.mrf.mxu1  ;;  %v574_v38 = vadd.f32 %v573_v27, %v2211_v30 }
 0x166   : > { %v962_v29 = vpop.f32.mrf.mxu2  ;;  %v663_v39 = vadd.f32 %v662_v28, %v2213_v31 }
 0x167   : > { %v1051_v35 = vpop.f32.mrf.mxu3  ;;  %v733_v56 = vmax.f32 %v574_v38, 0.0 }
 0x168   : > { %v1052_v36 = vadd.f32 %v1051_v35, %v962_v29  ;;  %v734_v3 = vmax.f32 %v663_v39, 0.0 }
 0x16a   : > { %v1234_v37 = vadd.f32 %v2310_v34, %v1052_v36 }
 0x16c   : > { %v1266_v40 = vadd.f32 %v1234_v37, %v2140_v47  ;;  %v575_v41 = vpop.f32.mrf.mxu0 }
 0x16d   : > { %v576_v44 = vadd.f32 %v575_v41, %v2211_v30  ;;  %v664_v45 = vpop.f32.mrf.mxu1 }
 0x16e   : > { %1298 = vst [vmem:[%s2319_s3] sm:$0xff] %v1266_v40  ;;  %v665_v46 = vadd.f32 %v664_v45, %v2213_v31  ;;  %v964_v53 = vpop.f32.mrf.mxu2 }
 0x16f   : > { %v735_v63 = vmax.f32 %v576_v44, 0.0  ;;  %v1053_v0 = vpop.f32.mrf.mxu3 }
 0x170   : > { %v736_v4 = vmax.f32 %v665_v46, 0.0  ;;  %v1054_v5 = vadd.f32 %v1053_v0, %v964_v53 }
 0x171   : > { %v811_v47 = vpack.c.bf16 %v735_v63, %v733_v56 }
 0x172   : > { %v1235_v6 = vadd.f32 %v2310_v34, %v1054_v5  ;;  %v812_v9 = vpack.c.bf16 %v736_v4, %v734_v3 }
 0x173   : > { %1006 = vmatmul.bf16.gmra.mxu2 %v811_v47 }
 0x174   : > { %v1267_v12 = vadd.f32 %v1235_v6, %v2143_v48  ;;  %1095 = vmatmul.bf16.gmra.mxu3 %v812_v9  ;;  %v578_v13 = vpop.f32.mrf.mxu0 }
 0x175   : > { %v667_v14 = vpop.f32.mrf.mxu1  ;;  %v579_v27 = vadd.f32 %v578_v13, %v2211_v30 }
 0x176   : > { %1299 = vst [vmem:[%s2319_s3 + $0x8] sm:$0xff] %v1267_v12  ;;  %v967_v15 = vpop.f32.mrf.mxu2  ;;  %v668_v28 = vadd.f32 %v667_v14, %v2213_v31 }
 0x177   : > { %v1056_v16 = vpop.f32.mrf.mxu3  ;;  %v737_v39 = vmax.f32 %v579_v27, 0.0 }
 0x178   : > { %v1057_v17 = vadd.f32 %v1056_v16, %v967_v15  ;;  %v738_v44 = vmax.f32 %v668_v28, 0.0 }
 0x17a   : > { %v1236_v26 = vadd.f32 %v2310_v34, %v1057_v17 }
 0x17c   : > { %v1268_v29 = vadd.f32 %v1236_v26, %v2148_v51  ;;  %v580_v35 = vpop.f32.mrf.mxu0 }
 0x17d   : > { %v581_v36 = vadd.f32 %v580_v35, %v2211_v30  ;;  %v669_v37 = vpop.f32.mrf.mxu1 }
 0x17e   : > { %1300 = vst [vmem:[%s2319_s3 + $0x10] sm:$0xff] %v1268_v29  ;;  %v670_v48 = vadd.f32 %v669_v37, %v2213_v31  ;;  %v969_v38 = vpop.f32.mrf.mxu2 }
 0x17f   : > { %v739_v40 = vmax.f32 %v581_v36, 0.0  ;;  %v1058_v41 = vpop.f32.mrf.mxu3 }
 0x180   : > { %v740_v45 = vmax.f32 %v670_v48, 0.0  ;;  %v1059_v46 = vadd.f32 %v1058_v41, %v969_v38 }
 0x181   : > { %v813_v53 = vpack.c.bf16 %v739_v40, %v737_v39 }
 0x182   : > { %v1237_v56 = vadd.f32 %v2310_v34, %v1059_v46  ;;  %v814_v63 = vpack.c.bf16 %v740_v45, %v738_v44 }
 0x183   : > { %1011 = vmatmul.bf16.gmra.mxu2 %v813_v53 }
 0x184   : > { %v1269_v51 = vadd.f32 %v1237_v56, %v2151_v52  ;;  %1100 = vmatmul.bf16.gmra.mxu3 %v814_v63  ;;  %v583_v0 = vpop.f32.mrf.mxu0 }
 0x185   : > { %v672_v3 = vpop.f32.mrf.mxu1  ;;  %v584_v9 = vadd.f32 %v583_v0, %v2211_v30 }
 0x186   : > { %1301 = vst [vmem:[%s2319_s3 + $0x18] sm:$0xff] %v1269_v51  ;;  %v972_v4 = vpop.f32.mrf.mxu2  ;;  %v673_v12 = vadd.f32 %v672_v3, %v2213_v31 }
 0x187   : > { %v1061_v5 = vpop.f32.mrf.mxu3  ;;  %v741_v26 = vmax.f32 %v584_v9, 0.0 }
 0x188   : > { %v1062_v47 = vadd.f32 %v1061_v5, %v972_v4  ;;  %v742_v29 = vmax.f32 %v673_v12, 0.0 }
 0x18a   : > { %v1238_v6 = vadd.f32 %v2310_v34, %v1062_v47 }
 0x18c   : > { %v1270_v13 = vadd.f32 %v1238_v6, %v2156_v54  ;;  %v585_v14 = vpop.f32.mrf.mxu0 }
 0x18d   : > { %v586_v15 = vadd.f32 %v585_v14, %v2211_v30  ;;  %v674_v16 = vpop.f32.mrf.mxu1 }
 0x18e   : > { %1302 = vst [vmem:[%s2319_s3 + $0x20] sm:$0xff] %v1270_v13  ;;  %v675_v52 = vadd.f32 %v674_v16, %v2213_v31  ;;  %v974_v17 = vpop.f32.mrf.mxu2 }
 0x18f   : > { %v743_v27 = vmax.f32 %v586_v15, 0.0  ;;  %v1063_v28 = vpop.f32.mrf.mxu3 }
 0x190   : > { %v744_v35 = vmax.f32 %v675_v52, 0.0  ;;  %v1064_v36 = vadd.f32 %v1063_v28, %v974_v17 }
 0x191   : > { %v815_v37 = vpack.c.bf16 %v743_v27, %v741_v26 }
 0x192   : > { %v1239_v48 = vadd.f32 %v2310_v34, %v1064_v36  ;;  %v816_v38 = vpack.c.bf16 %v744_v35, %v742_v29 }
 0x193   : > { %1016 = vmatmul.bf16.gmra.mxu2 %v815_v37 }
 0x194   : > { %v1271_v54 = vadd.f32 %v1239_v48, %v2159_v55  ;;  %1105 = vmatmul.bf16.gmra.mxu3 %v816_v38  ;;  %v588_v39 = vpop.f32.mrf.mxu0 }
 0x195   : > { %v677_v40 = vpop.f32.mrf.mxu1  ;;  %v589_v53 = vadd.f32 %v588_v39, %v2211_v30 }
 0x196   : > { %1303 = vst [vmem:[%s2319_s3 + $0x28] sm:$0xff] %v1271_v54  ;;  %v977_v41 = vpop.f32.mrf.mxu2  ;;  %v678_v56 = vadd.f32 %v677_v40, %v2213_v31 }
 0x197   : > { %v1066_v44 = vpop.f32.mrf.mxu3  ;;  %v745_v5 = vmax.f32 %v589_v53, 0.0 }
 0x198   : > { %v1067_v45 = vadd.f32 %v1066_v44, %v977_v41  ;;  %v746_v9 = vmax.f32 %v678_v56, 0.0 }
 0x19a   : > { %v1240_v46 = vadd.f32 %v2310_v34, %v1067_v45 }
 0x19c   : > { %v1272_v63 = vadd.f32 %v1240_v46, %v2164_v57  ;;  %v590_v51 = vpop.f32.mrf.mxu0 }
 0x19d   : > { %v591_v0 = vadd.f32 %v590_v51, %v2211_v30  ;;  %v679_v3 = vpop.f32.mrf.mxu1 }
 0x19e   : > { %1304 = vst [vmem:[%s2319_s3 + $0x30] sm:$0xff] %v1272_v63  ;;  %v680_v55 = vadd.f32 %v679_v3, %v2213_v31  ;;  %v979_v4 = vpop.f32.mrf.mxu2 }
 0x19f   : > { %v747_v47 = vmax.f32 %v591_v0, 0.0  ;;  %v1068_v6 = vpop.f32.mrf.mxu3 }
 0x1a0   : > { %v748_v12 = vmax.f32 %v680_v55, 0.0  ;;  %v1069_v13 = vadd.f32 %v1068_v6, %v979_v4 }
 0x1a1   : > { %v817_v14 = vpack.c.bf16 %v747_v47, %v745_v5 }
 0x1a2   : > { %v818_v15 = vpack.c.bf16 %v748_v12, %v746_v9  ;;  %v1241_v16 = vadd.f32 %v2310_v34, %v1069_v13 }
 0x1a3   : > { %1021 = vmatmul.bf16.gmra.mxu2 %v817_v14 }
 0x1a4   : > { %v1273_v57 = vadd.f32 %v1241_v16, %v2167_v58  ;;  %1110 = vmatmul.bf16.gmra.mxu3 %v818_v15  ;;  %v593_v52 = vpop.f32.mrf.mxu0 }
 0x1a5   : > { %v682_v17 = vpop.f32.mrf.mxu1  ;;  %v594_v35 = vadd.f32 %v593_v52, %v2211_v30 }
 0x1a6   : > { %1305 = vst [vmem:[%s2319_s3 + $0x38] sm:$0xff] %v1273_v57  ;;  %v982_v26 = vpop.f32.mrf.mxu2  ;;  %v683_v36 = vadd.f32 %v682_v17, %v2213_v31 }
 0x1a7   : > { %v1071_v27 = vpop.f32.mrf.mxu3  ;;  %v749_v40 = vmax.f32 %v594_v35, 0.0 }
 0x1a8   : > { %v1072_v28 = vadd.f32 %v1071_v27, %v982_v26  ;;  %v750_v45 = vmax.f32 %v683_v36, 0.0 }
 0x1aa   : > { %v1242_v29 = vadd.f32 %v2310_v34, %v1072_v28 }
 0x1ac   : > { %v1274_v37 = vadd.f32 %v1242_v29, %v2172_v60  ;;  %v595_v48 = vpop.f32.mrf.mxu0 }
 0x1ad   : > { %v596_v38 = vadd.f32 %v595_v48, %v2211_v30  ;;  %v684_v54 = vpop.f32.mrf.mxu1 }
 0x1ae   : > { %1306 = vst [vmem:[%s2319_s3 + $0x40] sm:$0xff] %v1274_v37  ;;  %v685_v58 = vadd.f32 %v684_v54, %v2213_v31  ;;  %v984_v39 = vpop.f32.mrf.mxu2 }
 0x1af   : > { %v751_v41 = vmax.f32 %v596_v38, 0.0  ;;  %v1073_v44 = vpop.f32.mrf.mxu3 }
 0x1b0   : > { %v752_v46 = vmax.f32 %v685_v58, 0.0  ;;  %v1074_v53 = vadd.f32 %v1073_v44, %v984_v39 }
 0x1b1   : > { %v819_v56 = vpack.c.bf16 %v751_v41, %v749_v40 }
 0x1b2   : > { %v820_v63 = vpack.c.bf16 %v752_v46, %v750_v45  ;;  %v1243_v51 = vadd.f32 %v2310_v34, %v1074_v53 }
 0x1b3   : > { %1026 = vmatmul.bf16.gmra.mxu2 %v819_v56 }
 0x1b4   : > { %v1275_v60 = vadd.f32 %v1243_v51, %v2175_v61  ;;  %1115 = vmatmul.bf16.gmra.mxu3 %v820_v63  ;;  %v598_v0 = vpop.f32.mrf.mxu0 }
 0x1b5   : > { %v687_v3 = vpop.f32.mrf.mxu1  ;;  %v599_v6 = vadd.f32 %v598_v0, %v2211_v30 }
 0x1b6   : > { %1307 = vst [vmem:[%s2319_s3 + $0x48] sm:$0xff] %v1275_v60  ;;  %v987_v55 = vpop.f32.mrf.mxu2  ;;  %v688_v9 = vadd.f32 %v687_v3, %v2213_v31 }
 0x1b7   : > { %v1076_v4 = vpop.f32.mrf.mxu3  ;;  %v753_v57 = vmax.f32 %v599_v6, 0.0 }
 0x1b8   : > { %v1077_v5 = vadd.f32 %v1076_v4, %v987_v55  ;;  %v754_v26 = vmax.f32 %v688_v9, 0.0 }
 0x1ba   : > { %v1244_v47 = vadd.f32 %v2310_v34, %v1077_v5 }
 0x1bc   : > { %v1276_v12 = vadd.f32 %v1244_v47, %v2180_v1  ;;  %v600_v13 = vpop.f32.mrf.mxu0 }
 0x1bd   : > { %v601_v14 = vadd.f32 %v600_v13, %v2211_v30  ;;  %v689_v15 = vpop.f32.mrf.mxu1 }
 0x1be   : > { %1308 = vst [vmem:[%s2319_s3 + $0x50] sm:$0xff] %v1276_v12  ;;  %v690_v61 = vadd.f32 %v689_v15, %v2213_v31  ;;  %v989_v16 = vpop.f32.mrf.mxu2 }
 0x1bf   : > { %v755_v52 = vmax.f32 %v601_v14, 0.0  ;;  %v1078_v17 = vpop.f32.mrf.mxu3 }
 0x1c0   : > { %v756_v27 = vmax.f32 %v690_v61, 0.0  ;;  %v1079_v28 = vadd.f32 %v1078_v17, %v989_v16 }
 0x1c1   : > { %v821_v29 = vpack.c.bf16 %v755_v52, %v753_v57 }
 0x1c2   : > { %v822_v35 = vpack.c.bf16 %v756_v27, %v754_v26  ;;  %v1245_v36 = vadd.f32 %v2310_v34, %v1079_v28 }
 0x1c3   : > { %1031 = vmatmul.bf16.gmra.mxu2 %v821_v29 }
 0x1c4   : > { %v1277_v1 = vadd.f32 %v1245_v36, %v2183_v2  ;;  %1120 = vmatmul.bf16.gmra.mxu3 %v822_v35  ;;  %v603_v37 = vpop.f32.mrf.mxu0 }
 0x1c5   : > { %v692_v48 = vpop.f32.mrf.mxu1  ;;  %v604_v40 = vadd.f32 %v603_v37, %v2211_v30 }
 0x1c6   : > { %1309 = vst [vmem:[%s2319_s3 + $0x58] sm:$0xff] %v1277_v1  ;;  %v992_v38 = vpop.f32.mrf.mxu2  ;;  %v693_v41 = vadd.f32 %v692_v48, %v2213_v31 }
 0x1c7   : > { %v1081_v54 = vpop.f32.mrf.mxu3  ;;  %v757_v63 = vmax.f32 %v604_v40, 0.0 }
 0x1c8   : > { %v1082_v58 = vadd.f32 %v1081_v54, %v992_v38  ;;  %v758_v0 = vmax.f32 %v693_v41, 0.0 }
 0x1ca   : > { %v1246_v39 = vadd.f32 %v2310_v34, %v1082_v58 }
 0x1cc   : > { %v1278_v44 = vadd.f32 %v1246_v39, %v2188_v10  ;;  %v605_v45 = vpop.f32.mrf.mxu0 }
 0x1cd   : > { %v606_v46 = vadd.f32 %v605_v45, %v2211_v30  ;;  %v694_v53 = vpop.f32.mrf.mxu1 }
 0x1ce   : > { %1310 = vst [vmem:[%s2319_s3 + $0x60] sm:$0xff] %v1278_v44  ;;  %v695_v2 = vadd.f32 %v694_v53, %v2213_v31  ;;  %v994_v56 = vpop.f32.mrf.mxu2 }
 0x1cf   : > { %v759_v51 = vmax.f32 %v606_v46, 0.0  ;;  %v1083_v60 = vpop.f32.mrf.mxu3 }
 0x1d0   : > { %v760_v3 = vmax.f32 %v695_v2, 0.0  ;;  %v1084_v55 = vadd.f32 %v1083_v60, %v994_v56 }
 0x1d1   : > { %v823_v4 = vpack.c.bf16 %v759_v51, %v757_v63 }
 0x1d2   : > { %v824_v5 = vpack.c.bf16 %v760_v3, %v758_v0  ;;  %v1247_v10 = vadd.f32 %v2310_v34, %v1084_v55 }
 0x1d3   : > { %1036 = vmatmul.bf16.gmra.mxu2 %v823_v4 }
 0x1d4   : > { %v1279_v30 = vadd.f32 %v1247_v10, %v2191_v11  ;;  %1125 = vmatmul.bf16.gmra.mxu3 %v824_v5 }
 0x1d6   : > { %1311 = vst [vmem:[%s2319_s3 + $0x68] sm:$0xff] %v1279_v30  ;;  %v997_v47 = vpop.f32.mrf.mxu2 }
 0x1d7   : > { %v1086_v31 = vpop.f32.mrf.mxu3 }
 0x1d8   : > { %v1087_v6 = vadd.f32 %v1086_v31, %v997_v47 }
 0x1da   : > { %v1248_v9 = vadd.f32 %v2310_v34, %v1087_v6 }
 0x1dc   : > { %v1280_v12 = vadd.f32 %v1248_v9, %v2196_v21 }
 0x1de   : > { %1312 = vst [vmem:[%s2319_s3 + $0x70] sm:$0xff] %v1280_v12  ;;  %v999_v13 = vpop.f32.mrf.mxu2 }
 0x1df   : > { %v1088_v14 = vpop.f32.mrf.mxu3 }
 0x1e0   : > { %v1089_v15 = vadd.f32 %v1088_v14, %v999_v13 }
 0x1e2   : > { %v1249_v61 = vadd.f32 %v2310_v34, %v1089_v15 }
 0x1e4   : > { %v1281_v16 = vadd.f32 %v1249_v61, %v2199_v22 }
 0x1e6   : > { %1313 = vst [vmem:[%s2319_s3 + $0x78] sm:$0xff] %v1281_v16  ;;  %v1002_v11 = vpop.f32.mrf.mxu2 }
 0x1e7   : > { %v1091_v57 = vpop.f32.mrf.mxu3 }
 0x1e8   : > { %v1092_v52 = vadd.f32 %v1091_v57, %v1002_v11 }
 0x1ea   : > { %v1250_v17 = vadd.f32 %v2310_v34, %v1092_v52 }
 0x1ec   : > { %v1282_v26 = vadd.f32 %v1250_v17, %v2204_v24 }
 0x1ee   : > { %1314 = vst [vmem:[%s2319_s3 + $0x80] sm:$0xff] %v1282_v26  ;;  %v1004_v21 = vpop.f32.mrf.mxu2 }
 0x1ef   : > { %v1093_v27 = vpop.f32.mrf.mxu3 }
 0x1f0   : > { %v1094_v28 = vadd.f32 %v1093_v27, %v1004_v21 }
 0x1f2   : > { %v1251_v29 = vadd.f32 %v2310_v34, %v1094_v28 }
 0x1f4   : > { %v1283_v35 = vadd.f32 %v1251_v29, %v2207_v25 }
 0x1f6   : > { %1315 = vst [vmem:[%s2319_s3 + $0x88] sm:$0xff] %v1283_v35  ;;  %v1007_v22 = vpop.f32.mrf.mxu2 }
 0x1f7   : > { %v1096_v36 = vpop.f32.mrf.mxu3 }
 0x1f8   : > { %v1097_v1 = vadd.f32 %v1096_v36, %v1007_v22 }
 0x1fa   : > { %v1252_v37 = vadd.f32 %v2310_v34, %v1097_v1 }
 0x1fc   : > { %v1284_v48 = vadd.f32 %v1252_v37, %v2220_v42 }
 0x1fe   : > { %1316 = vst [vmem:[%s2319_s3 + $0x90] sm:$0xff] %v1284_v48  ;;  %v1009_v24 = vpop.f32.mrf.mxu2 }
 0x1ff   : > { %v1098_v38 = vpop.f32.mrf.mxu3 }
 0x200   : > { %v1099_v54 = vadd.f32 %v1098_v38, %v1009_v24 }
 0x202   : > { %v1253_v58 = vadd.f32 %v2310_v34, %v1099_v54 }
 0x204   : > { %v1285_v39 = vadd.f32 %v1253_v58, %v2223_v43 }
 0x206   : > { %1317 = vst [vmem:[%s2319_s3 + $0x98] sm:$0xff] %v1285_v39  ;;  %v1012_v25 = vpop.f32.mrf.mxu2 }
 0x207   : > { %v1101_v40 = vpop.f32.mrf.mxu3 }
 0x208   : > { %v1102_v41 = vadd.f32 %v1101_v40, %v1012_v25 }
 0x20a   : > { %v1254_v44 = vadd.f32 %v2310_v34, %v1102_v41 }
 0x20c   : > { %v1286_v45 = vadd.f32 %v1254_v44, %v2232_v7 }
 0x20e   : > { %1318 = vst [vmem:[%s2319_s3 + $0xa0] sm:$0xff] %v1286_v45  ;;  %v1014_v42 = vpop.f32.mrf.mxu2 }
 0x20f   : > { %v1103_v46 = vpop.f32.mrf.mxu3 }
 0x210   : > { %v1104_v53 = vadd.f32 %v1103_v46, %v1014_v42 }
 0x212   : > { %v1255_v2 = vadd.f32 %v2310_v34, %v1104_v53 }
 0x214   : > { %v1287_v56 = vadd.f32 %v1255_v2, %v2235_v8 }
 0x216   : > { %1319 = vst [vmem:[%s2319_s3 + $0xa8] sm:$0xff] %v1287_v56  ;;  %v1017_v43 = vpop.f32.mrf.mxu2 }
 0x217   : > { %v1106_v63 = vpop.f32.mrf.mxu3 }
 0x218   : > { %v1107_v51 = vadd.f32 %v1106_v63, %v1017_v43 }
 0x21a   : > { %v1256_v60 = vadd.f32 %v2310_v34, %v1107_v51 }
 0x21c   : > { %v1288_v0 = vadd.f32 %v1256_v60, %v2244_v32 }
 0x21e   : > { %1320 = vst [vmem:[%s2319_s3 + $0xb0] sm:$0xff] %v1288_v0  ;;  %v1019_v7 = vpop.f32.mrf.mxu2 }
 0x21f   : > { %v1108_v3 = vpop.f32.mrf.mxu3 }
 0x220   : > { %v1109_v55 = vadd.f32 %v1108_v3, %v1019_v7 }
 0x222   : > { %v1257_v4 = vadd.f32 %v2310_v34, %v1109_v55 }
 0x224   : > { %v1289_v5 = vadd.f32 %v1257_v4, %v2247_v33 }
 0x226   : > { %1321 = vst [vmem:[%s2319_s3 + $0xb8] sm:$0xff] %v1289_v5  ;;  %v1022_v8 = vpop.f32.mrf.mxu2 }
 0x227   : > { %v1111_v10 = vpop.f32.mrf.mxu3 }
 0x228   : > { %v1112_v30 = vadd.f32 %v1111_v10, %v1022_v8 }
 0x22a   : > { %v1258_v47 = vadd.f32 %v2310_v34, %v1112_v30 }
 0x22c   : > { %v1290_v31 = vadd.f32 %v1258_v47, %v2256_v59 }
 0x22e   : > { %1322 = vst [vmem:[%s2319_s3 + $0xc0] sm:$0xff] %v1290_v31  ;;  %v1024_v32 = vpop.f32.mrf.mxu2 }
 0x22f   : > { %v1113_v6 = vpop.f32.mrf.mxu3 }
 0x230   : > { %v1114_v9 = vadd.f32 %v1113_v6, %v1024_v32 }
 0x232   : > { %v1259_v12 = vadd.f32 %v2310_v34, %v1114_v9 }
 0x234   : > { %v1291_v13 = vadd.f32 %v1259_v12, %v2259_v62 }
 0x236   : > { %1323 = vst [vmem:[%s2319_s3 + $0xc8] sm:$0xff] %v1291_v13  ;;  %v1027_v33 = vpop.f32.mrf.mxu2 }
 0x237   : > { %v1116_v14 = vpop.f32.mrf.mxu3 }
 0x238   : > { %v1117_v15 = vadd.f32 %v1116_v14, %v1027_v33 }
 0x23a   : > { %v1260_v61 = vadd.f32 %v2310_v34, %v1117_v15 }
 0x23c   : > { %v1292_v16 = vadd.f32 %v1260_v61, %v2268_v20 }
 0x23e   : > { %1324 = vst [vmem:[%s2319_s3 + $0xd0] sm:$0xff] %v1292_v16  ;;  %v1029_v59 = vpop.f32.mrf.mxu2 }
 0x23f   : > { %v1118_v11 = vpop.f32.mrf.mxu3 }
 0x240   : > { %v1119_v57 = vadd.f32 %v1118_v11, %v1029_v59 }
 0x242   : > { %v1261_v52 = vadd.f32 %v2310_v34, %v1119_v57 }
 0x244   : > { %v1293_v17 = vadd.f32 %v1261_v52, %v2271_v23 }
 0x246   : > { %1325 = vst [vmem:[%s2319_s3 + $0xd8] sm:$0xff] %v1293_v17  ;;  %v1032_v62 = vpop.f32.mrf.mxu2 }
 0x247   : > { %v1121_v26 = vpop.f32.mrf.mxu3 }
 0x248   : > { %v1122_v21 = vadd.f32 %v1121_v26, %v1032_v62 }
 0x24a   : > { %v1262_v27 = vadd.f32 %v2310_v34, %v1122_v21 }
 0x24c   : > { %v1294_v28 = vadd.f32 %v1262_v27, %v2280_v49 }
 0x24e   : > { %1326 = vst [vmem:[%s2319_s3 + $0xe0] sm:$0xff] %v1294_v28  ;;  %v1034_v20 = vpop.f32.mrf.mxu2 }
 0x24f   : > { %v1123_v29 = vpop.f32.mrf.mxu3 }
 0x250   : > { %v1124_v35 = vadd.f32 %v1123_v29, %v1034_v20 }
 0x252   : > { %v1263_v22 = vadd.f32 %v2310_v34, %v1124_v35 }
 0x254   : > { %v1295_v36 = vadd.f32 %v1263_v22, %v2283_v50 }
 0x256   : > { %1327 = vst [vmem:[%s2319_s3 + $0xe8] sm:$0xff] %v1295_v36  ;;  %v1037_v23 = vpop.f32.mrf.mxu2 }
 0x257   : > { %v1126_v1 = vpop.f32.mrf.mxu3 }
 0x258   : > { %v1127_v37 = vadd.f32 %v1126_v1, %v1037_v23 }
 0x25a   : > { %v1264_v48 = vadd.f32 %v2310_v34, %v1127_v37 }
 0x25c   : > { %v1296_v49 = vadd.f32 %v1264_v48, %v2292_v18 }
 0x25e   : > { %1328 = vst [vmem:[%s2319_s3 + $0xf0] sm:$0xff] %v1296_v49  ;;  %v1039_v24 = vpop.f32.mrf.mxu2 }
 0x25f   : > { %v1128_v38 = vpop.f32.mrf.mxu3 }
 0x260   : > { %v1129_v50 = vadd.f32 %v1128_v38, %v1039_v24 }
 0x262   : > { %v1265_v54 = vadd.f32 %v2310_v34, %v1129_v50 }
 0x264   : > { %v1297_v58 = vadd.f32 %v1265_v54, %v2295_v19 }
 0x266   : > { %1329 = vst [vmem:[%s2319_s3 + $0xf8] sm:$0xff] %v1297_v58 }
 0x267   : > { %1892 = shalt.err (!%p1889_p0)
}
 0x268   : > { %s1964_s10 = smov 128   ;;  %s1965_s14 = smov 8  }
 0x269   : > { %1659 = dma.vmem_to_hbm [thread:$0]  (%p2088_p3), %s1344_s16, 4096, %s1346_s11, %s1331_s21, %s1964_s10, %s1964_s10, %s1965_s14  }
 0x26a PF: > { %s1360_s1 = sand.u32 1, %s1935_s18   ;;  %p1676_p5 = pnand %p1468_p11, %p2045_p6 }
 0x26b   : > { %s1361_s2 = scalar_lea.sflag [#allocation5], %s1360_s1 }
 0x26c   : > { %p1677_p7 = pneg %p1676_p5 }
 0x26e   : > { %1930 = dma.done.wait (%p1677_p7), %s1361_s2, 4096  }
 0x26f   : > { %1932 = vsyncadd (%p1677_p7), %s1361_s2, 4294963200  ;;  %s23_s23 = sadd.s32 1, %s1955_s23   ;;  %s2503_s18 = smov %s1939_s19 }
 0x270   : > { %p20_p9 = scmp.ge.s32.totalorder %s23_s23, 4   ;;  %s2504_s19 = smov %s1943_s20 }
 0x271   : > { %s2505_s20 = smov %s2104_s27  ;;  %s2506_s21 = smov %s1951_s22 }
 0x272   : > { %s2507_s22 = smov %s2509_s17  ;;  %22 = sbr.rel (!%p20_p9) target bundleno = 12 (0xc), region = 108 }
 0x277   :  { %1367 = vsyncpa [#allocation4], 1 }
 0x278   :  { %1369 = vsyncpa [#allocation4 + $0x1], 1 }
 0x279   :  { %1370 = vsyncpa [#allocation7], 1 }
 0x27a   :  { %1371 = vsyncpa [#allocation10], 1 }
 0x27b   :  { %1372 = vsyncpa [#allocation5], 1 }
 0x27c   :  { %1374 = vsyncpa [#allocation5 + $0x1], 1 }

</bundles_post_ra>
